<compile_context>
chip_gen: v5e
topology: v5e:2x2
jax: 0.10.0
libtpu: 0.0.40
codegen_flags: <defaults>
</compile_context>

<pallas_src>
import functools

import jax
import jax.numpy as jnp
from jax.experimental import pallas as pl
from jax.experimental.pallas import tpu as pltpu

H1_DIM = 400    # fc1 width (already a multiple of the 8/16 sublane tiles)
H2_REAL = 300   # fc2 width (real)
H2_PAD = 384    # fc2 width padded to a lane multiple for the MXU output


def actor_kernel(state_ref, p32_ref, w2_ref, out_ref, *, max_action):
    """Whole MLP in one grid-less kernel; everything VMEM-resident.

    state_ref: (B, state_dim)               f32
    p32_ref:   (8, H1_DIM)                  f32 slab
               rows [0:state_dim]            -> w1
               row   state_dim               -> b1
               row   state_dim+1             -> b2  (first H2_REAL lanes valid)
               row   state_dim+2             -> b3  (first action_dim lanes)
               rows [state_dim+3 : +action_dim] -> w3 rows (first H2_REAL lanes)
    w2_ref:    (H1_DIM, H2_PAD)             bf16
    out_ref:   (B, action_dim)              f32
    """
    B, state_dim = state_ref.shape
    h1_dim, h2_dim = w2_ref.shape
    action_dim = out_ref.shape[1]

    x = state_ref[...]                                        # (B, sd) f32

    # --- fc1: K = state_dim is tiny -> VPU broadcast-FMAs, all f32. ---
    b1 = p32_ref[state_dim:state_dim + 1, :]                  # (1, 400)
    h1 = jnp.broadcast_to(b1, (B, h1_dim))
    for i in range(state_dim):                                # static, tiny
        h1 = h1 + x[:, i:i + 1] * p32_ref[i:i + 1, :]
    h1 = jnp.maximum(h1, 0.0)                                 # (B, 400)

    # --- fc2: bf16 operands on the MXU, f32 accumulation; bias/ReLU f32. ---
    b2 = p32_ref[state_dim + 1:state_dim + 2, :h2_dim]        # (1, 384)
    h2 = jnp.dot(h1.astype(jnp.bfloat16), w2_ref[...],
                 preferred_element_type=jnp.float32) + b2
    h2 = jnp.maximum(h2, 0.0)                                 # (B, 384)

    # --- fc3: VPU multiply + lane reduce (no MXU, no padded w3 DMA). ---
    b3_row = p32_ref[state_dim + 2:state_dim + 3, :]          # (1, 400)
    cols = []
    for j in range(action_dim):                               # static, tiny
        w3_j = p32_ref[state_dim + 3 + j:state_dim + 4 + j, :h2_dim]  # (1,384)
        cols.append(jnp.sum(h2 * w3_j, axis=-1, keepdims=True))       # (B, 1)
    a = cols[0] if action_dim == 1 else jnp.concatenate(cols, axis=-1)
    a = a + b3_row[:, :action_dim]
    out_ref[...] = jnp.tanh(a) * max_action                   # max_action is a
                                                              # compile-time const


@functools.partial(jax.jit, static_argnames=("max_action", "action_dim"))
def actor_forward(state, p32_slab, w2_bf16, max_action, action_dim):
    """state: (B, state_dim) f32 -> (B, action_dim) f32."""
    B, state_dim = state.shape
    h1_dim, h2_dim = w2_bf16.shape
    vmem = pl.BlockSpec(memory_space=pltpu.VMEM)
    cost = pl.CostEstimate(
        flops=2 * B * (state_dim * h1_dim + h1_dim * h2_dim + h2_dim * action_dim),
        transcendentals=B * action_dim,
        bytes_accessed=(state.size * 4 + p32_slab.size * 4
                        + w2_bf16.size * 2 + B * action_dim * 4),
    )
    return pl.pallas_call(
        functools.partial(actor_kernel, max_action=max_action),
        out_shape=jax.ShapeDtypeStruct((B, action_dim), jnp.float32),
        in_specs=[vmem, vmem, vmem],
        out_specs=vmem,
        cost_estimate=cost,
    )(state, p32_slab, w2_bf16)


def init_actor_params(key, state_dim, action_dim):
    """torch.nn.Linear default init (U[-1/sqrt(fan_in), +]), unpadded f32."""
    def linear(key, fan_in, fan_out):
        kw, kb = jax.random.split(key)
        bound = 1.0 / jnp.sqrt(jnp.float32(fan_in))
        w = jax.random.uniform(kw, (fan_in, fan_out), jnp.float32, -bound, bound)
        b = jax.random.uniform(kb, (1, fan_out), jnp.float32, -bound, bound)
        return w, b

    k1, k2, k3 = jax.random.split(key, 3)
    w1, b1 = linear(k1, state_dim, H1_DIM)
    w2, b2 = linear(k2, H1_DIM, H2_REAL)
    w3, b3 = linear(k3, H2_REAL, action_dim)
    return (w1, b1, w2, b2, w3, b3)


def prepare_kernel_params(params):
    """Pack into one f32 slab + one bf16 w2 slab. Done once; every padded
    entry is exactly zero so the real outputs are unchanged."""
    w1, b1, w2, b2, w3, b3 = params
    state_dim = w1.shape[0]
    action_dim = w3.shape[1]
    assert w1.shape[1] == H1_DIM and w2.shape == (H1_DIM, H2_REAL)

    rows = state_dim + 3 + action_dim
    rows_pad = ((rows + 7) // 8) * 8

    p32 = jnp.zeros((rows_pad, H1_DIM), jnp.float32)
    p32 = p32.at[0:state_dim, :].set(w1)
    p32 = p32.at[state_dim, :].set(b1[0])
    p32 = p32.at[state_dim + 1, :H2_REAL].set(b2[0])
    p32 = p32.at[state_dim + 2, :action_dim].set(b3[0])
    p32 = p32.at[state_dim + 3:state_dim + 3 + action_dim, :H2_REAL].set(w3.T)

    w2p = jnp.zeros((H1_DIM, H2_PAD), jnp.bfloat16)
    w2p = w2p.at[:, :H2_REAL].set(w2.astype(jnp.bfloat16))
    return p32, w2p


def actor_reference(state, params, max_action):
    """Pure-JAX f32 reference (unpadded, un-quantized weights)."""
    w1, b1, w2, b2, w3, b3 = params
    h1 = jnp.maximum(state @ w1 + b1, 0.0)
    h2 = jnp.maximum(h1 @ w2 + b2, 0.0)
    return jnp.tanh(h2 @ w3 + b3) * max_action


if __name__ == "__main__":
    # MountainCarContinuous-v0: state_dim=2, action_dim=1, max_action=1.0
    state_dim, action_dim, max_action = 2, 1, 1.0
    batch = 8

    key = jax.random.PRNGKey(0)
    key_params, key_state = jax.random.split(key)

    params = init_actor_params(key_params, state_dim, action_dim)
    p32_slab, w2_bf16 = jax.block_until_ready(prepare_kernel_params(params))
    state = jax.random.normal(key_state, (batch, state_dim), dtype=jnp.float32)

    out = actor_forward(state, p32_slab, w2_bf16, max_action, action_dim)
    out = jax.block_until_ready(out)

    ref = actor_reference(state, params, max_action)
    assert out.shape == (batch, action_dim), out.shape
    # Only fc2 runs through bf16 (weights + activations); fc1/fc3 are full f32,
    # so error is dominated by the single bf16 MXU stage.
    assert jnp.allclose(out, ref, atol=2e-2, rtol=2e-2), (out, ref)

    print("KERNEL_OK")
</pallas_src>

<mosaic_0001>
module attributes {stable_mosaic.version = 11 : i64} {
  func.func @actor_kernel(%arg0: memref<8x2xf32, #tpu.memory_space<vmem>>, %arg1: memref<8x400xf32, #tpu.memory_space<vmem>>, %arg2: memref<400x384xbf16, #tpu.memory_space<vmem>>, %arg3: memref<8x1xf32, #tpu.memory_space<vmem>>) attributes {dimension_semantics = [], scalar_prefetch = 0 : i64, scratch_operands = 0 : i64, tpu.core_type = #tpu.core_type<tc>} {
    %c0 = arith.constant 0 : index
    %c0_0 = arith.constant 0 : index
    %0 = vector.load %arg0[%c0, %c0_0] : memref<8x2xf32, #tpu.memory_space<vmem>>, vector<8x2xf32>
    %c2 = arith.constant 2 : index
    %c0_1 = arith.constant 0 : index
    %1 = vector.load %arg1[%c2, %c0_1] : memref<8x400xf32, #tpu.memory_space<vmem>>, vector<1x400xf32>
    %2 = vector.shape_cast %1 : vector<1x400xf32> to vector<1x400xf32>
    %3 = vector.broadcast %2 : vector<1x400xf32> to vector<8x400xf32>
    %4 = vector.extract_strided_slice %0 {offsets = [0, 0], sizes = [8, 1], strides = [1, 1]} : vector<8x2xf32> to vector<8x1xf32>
    %c0_2 = arith.constant 0 : index
    %c0_3 = arith.constant 0 : index
    %5 = vector.load %arg1[%c0_2, %c0_3] : memref<8x400xf32, #tpu.memory_space<vmem>>, vector<1x400xf32>
    %6 = vector.broadcast %4 : vector<8x1xf32> to vector<8x400xf32>
    %7 = vector.broadcast %5 : vector<1x400xf32> to vector<8x400xf32>
    %8 = arith.mulf %6, %7 : vector<8x400xf32>
    %9 = arith.addf %3, %8 : vector<8x400xf32>
    %10 = vector.extract_strided_slice %0 {offsets = [0, 1], sizes = [8, 1], strides = [1, 1]} : vector<8x2xf32> to vector<8x1xf32>
    %c1 = arith.constant 1 : index
    %c0_4 = arith.constant 0 : index
    %11 = vector.load %arg1[%c1, %c0_4] : memref<8x400xf32, #tpu.memory_space<vmem>>, vector<1x400xf32>
    %12 = vector.broadcast %10 : vector<8x1xf32> to vector<8x400xf32>
    %13 = vector.broadcast %11 : vector<1x400xf32> to vector<8x400xf32>
    %14 = arith.mulf %12, %13 : vector<8x400xf32>
    %15 = arith.addf %9, %14 : vector<8x400xf32>
    %cst = arith.constant 0.000000e+00 : f32
    %16 = vector.broadcast %cst : f32 to vector<8x400xf32>
    %17 = arith.maximumf %15, %16 : vector<8x400xf32>
    %c3 = arith.constant 3 : index
    %c0_5 = arith.constant 0 : index
    %18 = vector.load %arg1[%c3, %c0_5] : memref<8x400xf32, #tpu.memory_space<vmem>>, vector<1x384xf32>
    %19 = arith.truncf %17 : vector<8x400xf32> to vector<8x400xbf16>
    %c0_6 = arith.constant 0 : index
    %c0_7 = arith.constant 0 : index
    %20 = vector.load %arg2[%c0_6, %c0_7] : memref<400x384xbf16, #tpu.memory_space<vmem>>, vector<400x384xbf16>
    %cst_8 = arith.constant dense<0.000000e+00> : vector<8x384xf32>
    %21 = tpu.matmul %19, %20, %cst_8 {dimension_numbers = #tpu.dot_dimension_numbers<[1], [0], [0], [1], [0, 0, 1, 1], [], []>} : vector<8x400xbf16>, vector<400x384xbf16>, vector<8x384xf32> -> vector<8x384xf32>
    %22 = vector.broadcast %18 : vector<1x384xf32> to vector<8x384xf32>
    %23 = arith.addf %21, %22 : vector<8x384xf32>
    %cst_9 = arith.constant 0.000000e+00 : f32
    %24 = vector.broadcast %cst_9 : f32 to vector<8x384xf32>
    %25 = arith.maximumf %23, %24 : vector<8x384xf32>
    %c4 = arith.constant 4 : index
    %c0_10 = arith.constant 0 : index
    %26 = vector.load %arg1[%c4, %c0_10] : memref<8x400xf32, #tpu.memory_space<vmem>>, vector<1x400xf32>
    %c5 = arith.constant 5 : index
    %c0_11 = arith.constant 0 : index
    %27 = vector.load %arg1[%c5, %c0_11] : memref<8x400xf32, #tpu.memory_space<vmem>>, vector<1x384xf32>
    %28 = vector.broadcast %27 : vector<1x384xf32> to vector<8x384xf32>
    %29 = arith.mulf %25, %28 : vector<8x384xf32>
    %cst_12 = arith.constant dense<0.000000e+00> : vector<8xf32>
    %30 = vector.multi_reduction <add>, %29, %cst_12 [1] : vector<8x384xf32> to vector<8xf32>
    %31 = vector.shape_cast %30 : vector<8xf32> to vector<8x1xf32>
    %32 = vector.extract_strided_slice %26 {offsets = [0, 0], sizes = [1, 1], strides = [1, 1]} : vector<1x400xf32> to vector<1x1xf32>
    %33 = vector.broadcast %32 : vector<1x1xf32> to vector<8x1xf32>
    %34 = arith.addf %31, %33 : vector<8x1xf32>
    %35 = math.tanh %34 : vector<8x1xf32>
    %cst_13 = arith.constant 1.000000e+00 : f32
    %36 = vector.broadcast %cst_13 : f32 to vector<8x1xf32>
    %37 = arith.mulf %35, %36 : vector<8x1xf32>
    %c0_14 = arith.constant 0 : index
    %c0_15 = arith.constant 0 : index
    %38 = vector.load %arg3[%c0_14, %c0_15] : memref<8x1xf32, #tpu.memory_space<vmem>>, vector<8x1xf32>
    tpu.vector_store %arg3[%c0_14, %c0_15], %37 {strides = array<i32>} : memref<8x1xf32, #tpu.memory_space<vmem>>, vector<8x1xf32>,
    return
  }
}

</mosaic_0001>

<bundles_post_ra>
// kernel: actor_forward.1
= control target key start
LH: loop header
LB: loop body
LE: loop exit
PB: predicated region body
PF: predicated region fallthrough
CT: control target
= control target key end

     0   :  { %8 = vsyncpa [#allocation3], 0  ;;  %s1315_s0 = inlined_call_operand.vmem [shape: f32[8,2], index: 0, kind: input, shape index: {}]   ;;  %s1316_s1 = inlined_call_operand.hbm [shape: f32[8,400], index: 1, kind: input, shape index: {}]   ;;  %s1317_s2 = inlined_call_operand.hbm [shape: bf16[400,384], index: 2, kind: input, shape index: {}]   ;;  %s1318_s3 = inlined_call_operand.vmem [shape: f32[8,1], index: 3, kind: output, shape index: {}]  }
   0x1   :  { %s17_s14 = sshll.u32 %s1316_s1, 4  ;;  %s18_s14 = int_to_ptr.hbm [resolvable:$true] %s17_s14 }
   0x2   :  { %9 = vsyncpa [#allocation5], 0  ;;  %s1254_s15 = smov [#allocation2]   ;;  %s27_s19 = sshll.u32 %s1317_s2, 4  ;;  %s28_s19 = int_to_ptr.hbm [resolvable:$true] %s27_s19 }
   0x3   :  { %s19_s16 = sshll.u32 %s1254_s15, 4  ;;  %s1255_s20 = smov [#allocation4]   ;;  %s20_s16 = int_to_ptr.vmem [resolvable:$true] %s19_s16 }
   0x4   :  { %22 = dma.hbm_to_vmem [thread:$0]  %s18_s14, 512, %s20_s16, [#allocation3]  }
   0x5   :  { %s29_s21 = sshll.u32 %s1255_s20, 4  ;;  %s1256_s22 = smov 192   ;;  %s30_s21 = int_to_ptr.vmem [resolvable:$true] %s29_s21 }
   0x6   :  { %s1257_s23 = smov 12  }
   0x7   :  { %35 = dma.hbm_to_vmem [thread:$0]  %s28_s19, 9600, %s30_s21, [#allocation5], %s1256_s22, %s1256_s22, %s1257_s23  }
   0x8   :  { %1250 = dma.done.wait [#allocation3], 512  }
   0x9   :  { %1251 = vsyncadd [#allocation3], 4294966784 }
   0xa   :  { %1252 = dma.done.wait [#allocation5], 9600  }
   0xb   :  { %1253 = vsyncadd [#allocation5], 4294957696  ;;  %v1258_v0 = vmov 0   ;;  %v45_v1 = vld [vmem:[%s1315_s0] sm:$0xff]  ;;  %v900_v2 = vld [vmem:[#allocation4 + $0xa8] sm:$0xf] }
   0xc   :  { %1198 = vset.pattern.permute.xlu0 %v1258_v0  ;;  %v1139_v3 = vld [vmem:[#allocation4 + $0xb0] sm:$0xf0]  ;;  %v888_v5 = vld [vmem:[#allocation4 + $0x90] sm:$0xf]  ;;  %v1136_v6 = vld [vmem:[#allocation4 + $0x98] sm:$0xf0] }
   0xd   :  { %60 = vperm.xlu0 %1198, %v45_v1   ;;  %v901_v4 = vor.u32 %v1139_v3, %v900_v2  ;;  %v889_v7 = vor.u32 %v1136_v6, %v888_v5  ;;  %v876_v8 = vld [vmem:[#allocation4 + $0x78] sm:$0xf]  ;;  %v996_v9 = vld [vmem:[#allocation4 + $0x168] sm:$0xf]  ;;  %v1163_v10 = vld [vmem:[#allocation4 + $0x170] sm:$0xf0] }
   0xe   :  { %v1133_v11 = vld [vmem:[#allocation4 + $0x80] sm:$0xf0]  ;;  %v997_v12 = vor.u32 %v1163_v10, %v996_v9  ;;  %v984_v13 = vld [vmem:[#allocation4 + $0x150] sm:$0xf]  ;;  %v1160_v14 = vld [vmem:[#allocation4 + $0x158] sm:$0xf0] }
   0xf   :  { %624 = vmatpush.bf16.msra.mxu0 %v901_v4  ;;  %v985_v15 = vor.u32 %v1160_v14, %v984_v13  ;;  %v877_v16 = vor.u32 %v1133_v11, %v876_v8  ;;  %v972_v17 = vld [vmem:[#allocation4 + $0x138] sm:$0xf]  ;;  %v1157_v18 = vld [vmem:[#allocation4 + $0x140] sm:$0xf0]  ;;  %v1092_v19 = vld [vmem:[#allocation4 + $0x228] sm:$0xf] }
  0x10   :  { %637 = vmatpush.bf16.msra.mxu1 %v997_v12  ;;  %v864_v20 = vld [vmem:[#allocation4 + $0x60] sm:$0xf]  ;;  %v1130_v21 = vld [vmem:[#allocation4 + $0x68] sm:$0xf0]  ;;  %v1187_v22 = vld [vmem:[#allocation4 + $0x230] sm:$0xf0]  ;;  %v973_v27 = vor.u32 %v1157_v18, %v972_v17 }
  0x11   :  { %v1259_v23 = vmov 1   ;;  %v1093_v24 = vor.u32 %v1187_v22, %v1092_v19  ;;  %v1104_v25 = vld [vmem:[#allocation4 + $0x240] sm:$0xf]  ;;  %v1190_v26 = vld [vmem:[#allocation4 + $0x248] sm:$0xf0]  ;;  %v865_v31 = vor.u32 %v1130_v21, %v864_v20  ;;  %vm620_vm0 = vcmask 130048  }
  0x12   :  { %v1105_v28 = vor.u32 %v1190_v26, %v1104_v25  ;;  %v1138_v29 = vld [vmem:[#allocation4 + $0xac] sm:$0xf]  ;;  %v902_v30 = vld [vmem:[#allocation4 + $0xb4] sm:$0xf0]  ;;  %v960_v32 = vld [vmem:[#allocation4 + $0x120] sm:$0xf] }
  0x13   :  { %625 = vmatpush.bf16.msra.mxu0 %v889_v7  ;;  %v1154_v33 = vld [vmem:[#allocation4 + $0x128] sm:$0xf0]  ;;  %650 = vmatpush.bf16.msra.mxu2 %v1093_v24  ;;  %v905_v34 = vor.u32 %v1138_v29, %v902_v30  ;;  %v1080_v35 = vld [vmem:[#allocation4 + $0x210] sm:$0xf]  ;;  %v852_v36 = vld [vmem:[#allocation4 + $0x48] sm:$0xf] }
  0x14   :  { %638 = vmatpush.bf16.msra.mxu1 %v985_v15  ;;  %v1127_v37 = vld [vmem:[#allocation4 + $0x50] sm:$0xf0]  ;;  %670 = vmatpush.bf16.msra.mxu3 %v1105_v28  ;;  %v1184_v38 = vld [vmem:[#allocation4 + $0x218] sm:$0xf0]  ;;  %v890_v41 = vld [vmem:[#allocation4 + $0x9c] sm:$0xf0]  ;;  %v961_v42 = vor.u32 %v1154_v33, %v960_v32 }
  0x15   :  { %1199 = vset.pattern.permute.xlu0 %v1259_v23  ;;  %v1081_v39 = vor.u32 %v1184_v38, %v1080_v35  ;;  %v1135_v40 = vld [vmem:[#allocation4 + $0x94] sm:$0xf]  ;;  %v1068_v44 = vld [vmem:[#allocation4 + $0x1f8] sm:$0xf]  ;;  %v1181_v45 = vld [vmem:[#allocation4 + $0x200] sm:$0xf0]  ;;  %v853_v46 = vor.u32 %v1127_v37, %v852_v36 }
  0x16   :  { %83 = vperm.xlu0 %1199, %v45_v1   ;;  %v893_v43 = vor.u32 %v1135_v40, %v890_v41  ;;  %v948_v47 = vld [vmem:[#allocation4 + $0x108] sm:$0xf]  ;;  %v1151_v48 = vld [vmem:[#allocation4 + $0x110] sm:$0xf0]  ;;  %v1069_v49 = vor.u32 %v1181_v45, %v1068_v44  ;;  %v1132_v50 = vld [vmem:[#allocation4 + $0x7c] sm:$0xf] }
  0x17   :  { %626 = vmatpush.bf16.msra.mxu0 %v877_v16  ;;  %651 = vmatpush.bf16.msra.mxu2 %v1081_v39  ;;  %v840_v51 = vld [vmem:[#allocation4 + $0x30] sm:$0xf]  ;;  %v1124_v52 = vld [vmem:[#allocation4 + $0x38] sm:$0xf0]  ;;  %v878_v53 = vld [vmem:[#allocation4 + $0x84] sm:$0xf0]  ;;  %v949_v57 = vor.u32 %v1151_v48, %v948_v47 }
  0x18   :  { %676 = vmatpush.bf16.msrb.mxu3 %v905_v34  ;;  %639 = vmatpush.bf16.msra.mxu1 %v973_v27  ;;  %v881_v54 = vor.u32 %v1132_v50, %v878_v53  ;;  %v1056_v55 = vld [vmem:[#allocation4 + $0x1e0] sm:$0xf]  ;;  %v1178_v56 = vld [vmem:[#allocation4 + $0x1e8] sm:$0xf0]  ;;  %v841_v58 = vor.u32 %v1124_v52, %v840_v51  ;;  %v936_v59 = vld [vmem:[#allocation4 + $0xf0] sm:$0xf] }
  0x19   :  { %v1148_v60 = vld [vmem:[#allocation4 + $0xf8] sm:$0xf0]  ;;  %v1057_v61 = vor.u32 %v1178_v56, %v1056_v55  ;;  %v828_v62 = vld [vmem:[#allocation4 + $0x18] sm:$0xf]  ;;  %v1121_v63 = vld [vmem:[#allocation4 + $0x20] sm:$0xf0] }
  0x1a   :  { %v937_v0 = vor.u32 %v1148_v60, %v936_v59  ;;  %v829_v1 = vor.u32 %v1121_v63, %v828_v62  ;;  %v924_v2 = vld [vmem:[#allocation4 + $0xd8] sm:$0xf]  ;;  %v1145_v3 = vld [vmem:[#allocation4 + $0xe0] sm:$0xf0]  ;;  %v816_v4 = vld [vmem:[#allocation4] sm:$0xf] }
  0x1b   :  { %627 = vmatpush.bf16.msra.mxu0 %v865_v31  ;;  %652 = vmatpush.bf16.msra.mxu2 %v1069_v49  ;;  %v1118_v5 = vld [vmem:[#allocation4 + $0x8] sm:$0xf0]  ;;  %v998_v7 = vld [vmem:[#allocation4 + $0x174] sm:$0xf0]  ;;  %v925_v8 = vor.u32 %v1145_v3, %v924_v2  ;;  %v1159_v11 = vld [vmem:[#allocation4 + $0x154] sm:$0xf] }
  0x1c   :  { %677 = vmatpush.bf16.msrb.mxu3 %v893_v43  ;;  %640 = vmatpush.bf16.msra.mxu1 %v961_v42  ;;  %v1162_v6 = vld [vmem:[#allocation4 + $0x16c] sm:$0xf]  ;;  %v817_v9 = vor.u32 %v1118_v5, %v816_v4  ;;  %v986_v12 = vld [vmem:[#allocation4 + $0x15c] sm:$0xf0]  ;;  %v1156_v14 = vld [vmem:[#allocation4 + $0x13c] sm:$0xf] }
  0x1d   :  { %v1001_v10 = vor.u32 %v1162_v6, %v998_v7  ;;  %v989_v13 = vor.u32 %v1159_v11, %v986_v12  ;;  %v974_v15 = vld [vmem:[#allocation4 + $0x144] sm:$0xf0]  ;;  %v912_v17 = vld [vmem:[#allocation4 + $0xc0] sm:$0xf]  ;;  %v1142_v18 = vld [vmem:[#allocation4 + $0xc8] sm:$0xf0] }
  0x1e   :  { %v977_v16 = vor.u32 %v1156_v14, %v974_v15  ;;  %v1129_v19 = vld [vmem:[#allocation4 + $0x64] sm:$0xf]  ;;  %v913_v20 = vor.u32 %v1142_v18, %v912_v17  ;;  %v866_v21 = vld [vmem:[#allocation4 + $0x6c] sm:$0xf0]  ;;  %v1044_v26 = vld [vmem:[#allocation4 + $0x1c8] sm:$0xf] }
  0x1f   :  { %628 = vmatpush.bf16.msra.mxu0 %v853_v46  ;;  %653 = vmatpush.bf16.msra.mxu2 %v1057_v61  ;;  %v1153_v22 = vld [vmem:[#allocation4 + $0x124] sm:$0xf]  ;;  %v962_v23 = vld [vmem:[#allocation4 + $0x12c] sm:$0xf0]  ;;  %v869_v24 = vor.u32 %v1129_v19, %v866_v21  ;;  %v1175_v27 = vld [vmem:[#allocation4 + $0x1d0] sm:$0xf0] }
  0x20   :  { %678 = vmatpush.bf16.msrb.mxu3 %v881_v54  ;;  %641 = vmatpush.bf16.msra.mxu1 %v949_v57  ;;  %v965_v25 = vor.u32 %v1153_v22, %v962_v23  ;;  %v1186_v28 = vld [vmem:[#allocation4 + $0x22c] sm:$0xf]  ;;  %v1045_v29 = vor.u32 %v1175_v27, %v1044_v26  ;;  %v1094_v30 = vld [vmem:[#allocation4 + $0x234] sm:$0xf0]  ;;  %v1032_v37 = vld [vmem:[#allocation4 + $0x1b0] sm:$0xf] }
  0x21   :  { %v1126_v31 = vld [vmem:[#allocation4 + $0x4c] sm:$0xf]  ;;  %v854_v32 = vld [vmem:[#allocation4 + $0x54] sm:$0xf0]  ;;  %v1097_v33 = vor.u32 %v1186_v28, %v1094_v30  ;;  %v1172_v39 = vld [vmem:[#allocation4 + $0x1b8] sm:$0xf0] }
  0x22   :  { %v857_v34 = vor.u32 %v1126_v31, %v854_v32  ;;  %v1150_v35 = vld [vmem:[#allocation4 + $0x10c] sm:$0xf]  ;;  %v950_v36 = vld [vmem:[#allocation4 + $0x114] sm:$0xf0]  ;;  %v1183_v40 = vld [vmem:[#allocation4 + $0x214] sm:$0xf]  ;;  %v1033_v42 = vor.u32 %v1172_v39, %v1032_v37 }
  0x23   :  { %629 = vmatpush.bf16.msra.mxu0 %v841_v58  ;;  %654 = vmatpush.bf16.msra.mxu2 %v1045_v29  ;;  %v953_v38 = vor.u32 %v1150_v35, %v950_v36  ;;  %v1082_v41 = vld [vmem:[#allocation4 + $0x21c] sm:$0xf0]  ;;  %v1123_v44 = vld [vmem:[#allocation4 + $0x34] sm:$0xf]  ;;  %v1020_v49 = vld [vmem:[#allocation4 + $0x198] sm:$0xf] }
  0x24   :  { %642 = vmatpush.bf16.msra.mxu1 %v937_v0  ;;  %679 = vmatpush.bf16.msrb.mxu3 %v869_v24  ;;  %v1085_v43 = vor.u32 %v1183_v40, %v1082_v41  ;;  %v842_v45 = vld [vmem:[#allocation4 + $0x3c] sm:$0xf0]  ;;  %v1147_v46 = vld [vmem:[#allocation4 + $0xf4] sm:$0xf]  ;;  %v1169_v50 = vld [vmem:[#allocation4 + $0x1a0] sm:$0xf0] }
  0x25   :  { %v845_v47 = vor.u32 %v1123_v44, %v842_v45  ;;  %v938_v48 = vld [vmem:[#allocation4 + $0xfc] sm:$0xf0]  ;;  %v1021_v52 = vor.u32 %v1169_v50, %v1020_v49  ;;  %v1180_v53 = vld [vmem:[#allocation4 + $0x1fc] sm:$0xf]  ;;  %v1070_v54 = vld [vmem:[#allocation4 + $0x204] sm:$0xf0] }
  0x26   :  { %v941_v51 = vor.u32 %v1147_v46, %v938_v48  ;;  %v1073_v55 = vor.u32 %v1180_v53, %v1070_v54  ;;  %v1120_v56 = vld [vmem:[#allocation4 + $0x1c] sm:$0xf]  ;;  %v830_v57 = vld [vmem:[#allocation4 + $0x24] sm:$0xf0]  ;;  %v1008_v61 = vld [vmem:[#allocation4 + $0x180] sm:$0xf] }
  0x27   :  { %630 = vmatpush.bf16.msra.mxu0 %v829_v1  ;;  %655 = vmatpush.bf16.msra.mxu2 %v1033_v42  ;;  %v1144_v58 = vld [vmem:[#allocation4 + $0xdc] sm:$0xf]  ;;  %v833_v59 = vor.u32 %v1120_v56, %v830_v57  ;;  %v926_v60 = vld [vmem:[#allocation4 + $0xe4] sm:$0xf0]  ;;  %v1166_v62 = vld [vmem:[#allocation4 + $0x188] sm:$0xf0] }
  0x28   :  { %643 = vmatpush.bf16.msra.mxu1 %v925_v8  ;;  %680 = vmatpush.bf16.msrb.mxu3 %v857_v34  ;;  %v929_v63 = vor.u32 %v1144_v58, %v926_v60  ;;  %v1009_v0 = vor.u32 %v1166_v62, %v1008_v61  ;;  %v1177_v1 = vld [vmem:[#allocation4 + $0x1e4] sm:$0xf]  ;;  %v1058_v2 = vld [vmem:[#allocation4 + $0x1ec] sm:$0xf0]  ;;  %v1046_v14 = vld [vmem:[#allocation4 + $0x1d4] sm:$0xf0] }
  0x29   :  { %v1061_v3 = vor.u32 %v1177_v1, %v1058_v2  ;;  %v1117_v4 = vld [vmem:[#allocation4 + $0x4] sm:$0xf]  ;;  %v818_v5 = vld [vmem:[#allocation4 + $0xc] sm:$0xf0]  ;;  %v1034_v17 = vld [vmem:[#allocation4 + $0x1bc] sm:$0xf0] }
  0x2a   :  { %v1141_v6 = vld [vmem:[#allocation4 + $0xc4] sm:$0xf]  ;;  %v821_v7 = vor.u32 %v1117_v4, %v818_v5  ;;  %v914_v8 = vld [vmem:[#allocation4 + $0xcc] sm:$0xf0]  ;;  %v1168_v19 = vld [vmem:[#allocation4 + $0x19c] sm:$0xf] }
  0x2b   :  { %631 = vmatpush.bf16.msra.mxu0 %v817_v9  ;;  %656 = vmatpush.bf16.msra.mxu2 %v1021_v52  ;;  %v1189_v9 = vld [vmem:[#allocation4 + $0x244] sm:$0xf]  ;;  %v917_v11 = vor.u32 %v1141_v6, %v914_v8  ;;  %v57_v22 = vld [vmem:[#allocation2] ss:$8 sm:$0xf]  ;;  %vm806_vm1 = vcmask 7168  }
  0x2c   :  { %644 = vmatpush.bf16.msra.mxu1 %v913_v20  ;;  %681 = vmatpush.bf16.msrb.mxu3 %v845_v47  ;;  %v1022_v20 = vld [vmem:[#allocation4 + $0x1a4] sm:$0xf0]  ;;  %v1165_v23 = vld [vmem:[#allocation4 + $0x184] sm:$0xf]  ;;  %v1010_v24 = vld [vmem:[#allocation4 + $0x18c] sm:$0xf0] }
  0x2d   :  { %v1025_v21 = vor.u32 %v1168_v19, %v1022_v20  ;;  %v64_v26 = vperm.slane %v57_v22, 0  ;;  %v65_v28 = vperm.slane %v57_v22, 1  ;;  %v66_v29 = vperm.slane %v57_v22, 2  ;;  %v47_v31 = vld [vmem:[#allocation2 + $0x2] ss:$8 sm:$0xf] }
  0x2e   :  { %v67_v30 = vperm.slane %v57_v22, 3  ;;  %v81_v32 = vld [vmem:[#allocation2 + $0x1] ss:$8 sm:$0xf]  ;;  %v50_v34 = vperm.slane %v47_v31, 1  ;;  %v51_v35 = vperm.slane %v47_v31, 2 }
  0x2f   :  { %689 = vmatpush.bf16.msrb.mxu0 %v1001_v10  ;;  %657 = vmatpush.bf16.msra.mxu2 %v1009_v0  ;;  %v1106_v10 = vld [vmem:[#allocation4 + $0x24c] sm:$0xf0]  ;;  %v52_v36 = vperm.slane %v47_v31, 3  ;;  %v87_v41 = vperm.slane %v81_v32, 0  ;;  %v88_v42 = vperm.slane %v81_v32, 1  ;;  %v90_v44 = vperm.slane %v81_v32, 3 }
  0x30   :  { %702 = vmatpush.bf16.msrb.mxu1 %v1097_v33  ;;  %682 = vmatpush.bf16.msrb.mxu3 %v833_v59  ;;  %v1109_v12 = vor.u32 %v1189_v9, %v1106_v10  ;;  %v49_v33 = vperm.slane %v47_v31, 0  ;;  %v908_v54 = vld [vmem:[#allocation4 + $0xb0] sm:$0xf]  ;;  %v1140_v59 = vld [vmem:[#allocation4 + $0xb8] sm:$0xf0] }
  0x31   :  { %v1004_v60 = vld [vmem:[#allocation4 + $0x170] sm:$0xf]  ;;  %v1164_v61 = vld [vmem:[#allocation4 + $0x178] sm:$0xf0]  ;;  %v1112_v0 = vld [vmem:[#allocation4 + $0x248] sm:$0xf]  ;;  %v909_v6 = vor.u32 %v1140_v59, %v908_v54 }
  0x32   :  { %v1100_v62 = vld [vmem:[#allocation4 + $0x230] sm:$0xf]  ;;  %v1191_v5 = vld [vmem:[#allocation4 + $0x250] sm:$0xf0]  ;;  %v1185_v19 = vld [vmem:[#allocation4 + $0x220] sm:$0xf0] }
  0x33   :  { %690 = vmatpush.bf16.msrb.mxu0 %v989_v13  ;;  %v1174_v13 = vld [vmem:[#allocation4 + $0x1cc] sm:$0xf]  ;;  %722 = vmatpush.bf16.msrb.mxu2 %v1109_v12  ;;  %v896_v12 = vld [vmem:[#allocation4 + $0x98] sm:$0xf]  ;;  %v884_v22 = vld [vmem:[#allocation4 + $0x80] sm:$0xf] }
  0x34   :  { %703 = vmatpush.bf16.msrb.mxu1 %v1085_v43  ;;  %683 = vmatpush.bf16.msrb.mxu3 %v821_v7  ;;  %v1049_v15 = vor.u32 %v1174_v13, %v1046_v14  ;;  %v89_v43 = vperm.slane %v81_v32, 2  ;;  %v1005_v7 = vor.u32 %v1164_v61, %v1004_v60  ;;  %v1137_v14 = vld [vmem:[#allocation4 + $0xa0] sm:$0xf0]  ;;  %v872_v31 = vld [vmem:[#allocation4 + $0x68] sm:$0xf] }
  0x35   :  { %v897_v20 = vor.u32 %v1137_v14, %v896_v12  ;;  %v1040_v54 = vld [vmem:[#allocation4 + $0x1b8] sm:$0xf]  ;;  %v1122_v60 = vld [vmem:[#allocation4 + $0x28] sm:$0xf0]  ;;  %v932_v61 = vld [vmem:[#allocation4 + $0xe0] sm:$0xf] }
  0x36   :  { %v1016_v12 = vld [vmem:[#allocation4 + $0x188] sm:$0xf] }
  0x37   :  { %691 = vmatpush.bf16.msrb.mxu0 %v977_v16  ;;  %v1171_v16 = vld [vmem:[#allocation4 + $0x1b4] sm:$0xf] }
  0x38   :  { %704 = vmatpush.bf16.msrb.mxu1 %v1073_v55  ;;  %v1037_v18 = vor.u32 %v1171_v16, %v1034_v17  ;;  %v1161_v16 = vld [vmem:[#allocation4 + $0x160] sm:$0xf0]  ;;  %v1113_v17 = vor.u32 %v1191_v5, %v1112_v0  ;;  %v1170_v0 = vld [vmem:[#allocation4 + $0x1a8] sm:$0xf0]  ;;  %v1119_v5 = vld [vmem:[#allocation4 + $0x10] sm:$0xf0] }
  0x3b   :  { %692 = vmatpush.bf16.msrb.mxu0 %v965_v25  ;;  %v1013_v25 = vor.u32 %v1165_v23, %v1010_v24  ;;  %v1134_v24 = vld [vmem:[#allocation4 + $0x88] sm:$0xf0] }
  0x3c   :  { %705 = vmatpush.bf16.msrb.mxu1 %v1061_v3 }
  0x3f   :  { %693 = vmatpush.bf16.msrb.mxu0 %v953_v38 }
  0x40   :  { %706 = vmatpush.bf16.msrb.mxu1 %v1049_v15  ;;  %v992_v15 = vld [vmem:[#allocation4 + $0x158] sm:$0xf] }
  0x43   :  { %694 = vmatpush.bf16.msrb.mxu0 %v941_v51 }
  0x44   :  { %707 = vmatpush.bf16.msrb.mxu1 %v1037_v18  ;;  %v1088_v18 = vld [vmem:[#allocation4 + $0x218] sm:$0xf] }
  0x45   :  { %v1089_v23 = vor.u32 %v1185_v19, %v1088_v18 }
  0x47   :  { %695 = vmatpush.bf16.msrb.mxu0 %v929_v63  ;;  %v1188_v63 = vld [vmem:[#allocation4 + $0x238] sm:$0xf0] }
  0x48   :  { %708 = vmatpush.bf16.msrb.mxu1 %v1025_v21  ;;  %v1101_v13 = vor.u32 %v1188_v63, %v1100_v62  ;;  %v993_v21 = vor.u32 %v1161_v16, %v992_v15  ;;  %v1146_v62 = vld [vmem:[#allocation4 + $0xe8] sm:$0xf0]  ;;  %v1028_v63 = vld [vmem:[#allocation4 + $0x1a0] sm:$0xf] }
  0x4b   :  { %696 = vmatpush.bf16.msrb.mxu0 %v917_v11 }
  0x4c   :  { %709 = vmatpush.bf16.msrb.mxu1 %v1013_v25  ;;  %v980_v25 = vld [vmem:[#allocation4 + $0x140] sm:$0xf] }
  0x7f   :  { %v61_v27 = vpop.permute.xlu0 %60 }
  0x80   :  { %v72_v37 = vmul.f32 %v64_v26, %v61_v27  ;;  %v73_v38 = vmul.f32 %v65_v28, %v61_v27  ;;  %v74_v39 = vmul.f32 %v66_v29, %v61_v27  ;;  %v75_v40 = vmul.f32 %v67_v30, %v61_v27  ;;  %v1158_v26 = vld [vmem:[#allocation4 + $0x148] sm:$0xf0]  ;;  %v1076_v27 = vld [vmem:[#allocation4 + $0x200] sm:$0xf] }
  0x81   :  { %v1182_v28 = vld [vmem:[#allocation4 + $0x208] sm:$0xf0]  ;;  %v885_v29 = vor.u32 %v1134_v24, %v884_v22  ;;  %v981_v30 = vor.u32 %v1158_v26, %v980_v25 }
  0x82   :  { %v76_v46 = vadd.f32 %v72_v37, %v49_v33  ;;  %v77_v47 = vadd.f32 %v73_v38, %v50_v34  ;;  %v78_v48 = vadd.f32 %v74_v39, %v51_v35  ;;  %v79_v49 = vadd.f32 %v75_v40, %v52_v36  ;;  %v1131_v33 = vld [vmem:[#allocation4 + $0x70] sm:$0xf0]  ;;  %v968_v34 = vld [vmem:[#allocation4 + $0x128] sm:$0xf]  ;;  %v860_v40 = vld [vmem:[#allocation4 + $0x50] sm:$0xf] }
  0x83   :  { %v1077_v32 = vor.u32 %v1182_v28, %v1076_v27  ;;  %v1155_v35 = vld [vmem:[#allocation4 + $0x130] sm:$0xf0]  ;;  %v1064_v36 = vld [vmem:[#allocation4 + $0x1e8] sm:$0xf]  ;;  %v873_v38 = vor.u32 %v1131_v33, %v872_v31 }
  0x84   :  { %v1179_v37 = vld [vmem:[#allocation4 + $0x1f0] sm:$0xf0]  ;;  %v969_v39 = vor.u32 %v1155_v35, %v968_v34  ;;  %v108_v27 = vld [vmem:[#allocation2 + $0x3] ss:$8 sm:$0x7] }
  0x85   :  { %v215_v28 = vperm.slane %v108_v27, 1  ;;  %v214_v31 = vperm.slane %v108_v27, 0 }
  0x88   :  { %v84_v45 = vpop.permute.xlu0 %83 }
  0x89   :  { %v95_v50 = vmul.f32 %v87_v41, %v84_v45  ;;  %v96_v51 = vmul.f32 %v88_v42, %v84_v45  ;;  %v97_v52 = vmul.f32 %v89_v43, %v84_v45  ;;  %v98_v53 = vmul.f32 %v90_v44, %v84_v45  ;;  %v1128_v42 = vld [vmem:[#allocation4 + $0x58] sm:$0xf0]  ;;  %v956_v43 = vld [vmem:[#allocation4 + $0x110] sm:$0xf] }
  0x8a   :  { %v1065_v41 = vor.u32 %v1179_v37, %v1064_v36  ;;  %v1152_v44 = vld [vmem:[#allocation4 + $0x118] sm:$0xf0]  ;;  %v1052_v45 = vld [vmem:[#allocation4 + $0x1d0] sm:$0xf] }
  0x8b   :  { %v99_v55 = vadd.f32 %v95_v50, %v76_v46  ;;  %v100_v56 = vadd.f32 %v96_v51, %v77_v47  ;;  %v101_v57 = vadd.f32 %v97_v52, %v78_v48  ;;  %v102_v58 = vadd.f32 %v98_v53, %v79_v49  ;;  %v1176_v46 = vld [vmem:[#allocation4 + $0x1d8] sm:$0xf0]  ;;  %v848_v49 = vld [vmem:[#allocation4 + $0x38] sm:$0xf]  ;;  %v1125_v51 = vld [vmem:[#allocation4 + $0x40] sm:$0xf0] }
  0x8c   :  { %v861_v47 = vor.u32 %v1128_v42, %v860_v40  ;;  %v957_v48 = vor.u32 %v1152_v44, %v956_v43  ;;  %v1053_v50 = vor.u32 %v1176_v46, %v1052_v45  ;;  %v944_v52 = vld [vmem:[#allocation4 + $0xf8] sm:$0xf]  ;;  %v1149_v53 = vld [vmem:[#allocation4 + $0x100] sm:$0xf0]  ;;  %v216_v40 = vperm.slane %v108_v27, 2 }
  0x8d   :  { %v103_v1 = vmax.f32 %v99_v55, 0.0  ;;  %v104_v2 = vmax.f32 %v100_v56, 0.0  ;;  %v105_v3 = vmax.f32 %v101_v57, 0.0  ;;  %v106_v4 = vmax.f32 %v102_v58, 0.0  ;;  %v1173_v55 = vld [vmem:[#allocation4 + $0x1c0] sm:$0xf0] }
  0x8e   :  { %v849_v56 = vor.u32 %v1125_v51, %v848_v49  ;;  %v945_v57 = vor.u32 %v1149_v53, %v944_v52  ;;  %v836_v58 = vld [vmem:[#allocation4 + $0x20] sm:$0xf]  ;;  %v1041_v59 = vor.u32 %v1173_v55, %v1040_v54 }
  0x8f   :  { %v1289_v8 = vpack.c.bf16 %v103_v1, %v103_v1  ;;  %v1291_v9 = vpack.c.bf16 %v104_v2, %v104_v2  ;;  %v1293_v10 = vpack.c.bf16 %v105_v3, %v105_v3  ;;  %v1295_v11 = vpack.c.bf16 %v106_v4, %v106_v4  ;;  %v824_v3 = vld [vmem:[#allocation4 + $0x8] sm:$0xf] }
  0x90   :  { %v837_v1 = vor.u32 %v1122_v60, %v836_v58  ;;  %v933_v2 = vor.u32 %v1146_v62, %v932_v61  ;;  %v1029_v4 = vor.u32 %v1170_v0, %v1028_v63  ;;  %v825_v14 = vor.u32 %v1119_v5, %v824_v3 }
  0x91   :  { %632 = vmatmul.bf16.vlgmr.msra.gmra.mxu0 %v1289_v8  ;;  %645 = vmatmul.bf16.vlgmr.msra.gmra.mxu1 %v1291_v9 }
  0x92   :  { %658 = vmatmul.bf16.vlgmr.msra.gmra.mxu2 %v1293_v10  ;;  %1114 = vmatmul.msk.bf16.vlgmr.msra.gmra.mxu3 %vm620_vm0, %v1295_v11 }
  0x93   :  { %728 = vmatpush.bf16.msra.mxu3 %v909_v6  ;;  %741 = vmatpush.bf16.msra.mxu2 %v1005_v7  ;;  %v920_v6 = vld [vmem:[#allocation4 + $0xc8] sm:$0xf]  ;;  %v1143_v7 = vld [vmem:[#allocation4 + $0xd0] sm:$0xf0] }
  0x94   :  { %754 = vmatpush.bf16.msra.mxu0 %v1101_v13  ;;  %774 = vmatpush.bf16.msra.mxu1 %v1113_v17  ;;  %v1167_v13 = vld [vmem:[#allocation4 + $0x190] sm:$0xf0]  ;;  %v921_v15 = vor.u32 %v1143_v7, %v920_v6 }
  0x95   :  { %v1017_v16 = vor.u32 %v1167_v13, %v1016_v12 }
  0x97   :  { %729 = vmatpush.bf16.msra.mxu3 %v897_v20  ;;  %742 = vmatpush.bf16.msra.mxu2 %v993_v21 }
  0x98   :  { %755 = vmatpush.bf16.msra.mxu0 %v1089_v23 }
  0x9b   :  { %730 = vmatpush.bf16.msra.mxu3 %v885_v29  ;;  %743 = vmatpush.bf16.msra.mxu2 %v981_v30 }
  0x9c   :  { %756 = vmatpush.bf16.msra.mxu0 %v1077_v32 }
  0x9f   :  { %731 = vmatpush.bf16.msra.mxu3 %v873_v38  ;;  %744 = vmatpush.bf16.msra.mxu2 %v969_v39 }
  0xa0   :  { %757 = vmatpush.bf16.msra.mxu0 %v1065_v41 }
  0xa1   :  { %697 = vmatmul.bf16.vlgmr.msrb.gmra.mxu0 %v1291_v9  ;;  %710 = vmatmul.bf16.vlgmr.msrb.gmra.mxu1 %v1293_v10 }
  0xa2   :  { %684 = vmatmul.bf16.vlgmr.msrb.gmra.mxu3 %v1289_v8  ;;  %1115 = vmatmul.msk.bf16.vlgmr.msrb.gmra.mxu2 %vm620_vm0, %v1295_v11 }
  0xa3   :  { %732 = vmatpush.bf16.msra.mxu3 %v861_v47  ;;  %745 = vmatpush.bf16.msra.mxu2 %v957_v48  ;;  %v786_v47 = vld [vmem:[#allocation2 + $0x5] ss:$8 sm:$0x7] }
  0xa4   :  { %758 = vmatpush.bf16.msra.mxu0 %v1053_v50  ;;  %v789_v49 = vperm.slane %v786_v47, 1  ;;  %v788_v53 = vperm.slane %v786_v47, 0 }
  0xa7   :  { %733 = vmatpush.bf16.msra.mxu3 %v849_v56  ;;  %746 = vmatpush.bf16.msra.mxu2 %v945_v57  ;;  %v790_v57 = vperm.slane %v786_v47, 2 }
  0xa8   :  { %759 = vmatpush.bf16.msra.mxu0 %v1041_v59 }
  0xab   :  { %734 = vmatpush.bf16.msra.mxu3 %v837_v1  ;;  %747 = vmatpush.bf16.msra.mxu2 %v933_v2  ;;  %v784_v1 = vld [vmem:[#allocation2 + $0x4] ss:$8 sm:$0xf] }
  0xac   :  { %760 = vmatpush.bf16.msra.mxu0 %v1029_v4  ;;  %v802_v2 = vperm.slane %v784_v1, 0 }
  0xaf   :  { %735 = vmatpush.bf16.msra.mxu3 %v825_v14  ;;  %748 = vmatpush.bf16.msra.mxu2 %v921_v15 }
  0xb0   :  { %761 = vmatpush.bf16.msra.mxu0 %v1017_v16 }
  0xb1   :  { %1116 = vmatmul.msk.bf16.vlgmr.msra.gmra.mxu1 %vm620_vm0, %v1295_v11 }
  0xb2   :  { %736 = vmatmul.bf16.vlgmr.msra.gmra.mxu3 %v1289_v8  ;;  %749 = vmatmul.bf16.vlgmr.msra.gmra.mxu2 %v1291_v9 }
  0xb3   :  { %762 = vmatmul.bf16.vlgmr.msra.gmra.mxu0 %v1293_v10 }
 0x10e   :  { %v633_v17 = vpop.f32.mrf.mxu0  ;;  %v646_v18 = vpop.f32.mrf.mxu1 }
 0x10f   :  { %v634_v32 = vadd.f32 %v633_v17, %v214_v31 }
 0x111   :  { %v647_v36 = vadd.f32 %v646_v18, %v634_v32 }
 0x115   :  { %v659_v19 = vpop.f32.mrf.mxu2  ;;  %v672_v20 = vpop.f32.mrf.mxu3 }
 0x116   :  { %v635_v21 = vpop.f32.mrf.mxu0  ;;  %v648_v22 = vpop.f32.mrf.mxu1  ;;  %v660_v39 = vadd.f32 %v659_v19, %v647_v36 }
 0x118   :  { %v673_v44 = vadd.f32 %v672_v20, %v660_v39 }
 0x11a   :  { %v780_v52 = vmax.f32 %v673_v44, 0.0 }
 0x11c   :  { %v794_v60 = vmul.f32 %v788_v53, %v780_v52 }
 0x11d   :  { %v661_v23 = vpop.f32.mrf.mxu2  ;;  %v674_v24 = vpop.f32.mrf.mxu3 }
 0x11e   :  { %v698_v25 = vpop.f32.mrf.mxu0  ;;  %v711_v26 = vpop.f32.mrf.mxu1 }
 0x125   :  { %v685_v29 = vpop.f32.mrf.mxu3  ;;  %v724_v11 = vpop.f32.mrf.mxu2 }
 0x126   :  { %v700_v30 = vpop.f32.mrf.mxu0  ;;  %v713_v8 = vpop.f32.mrf.mxu1  ;;  %v686_v9 = vadd.f32 %v685_v29, %v215_v28 }
 0x128   :  { %v699_v10 = vadd.f32 %v698_v25, %v686_v9 }
 0x12a   :  { %v712_v37 = vadd.f32 %v711_v26, %v699_v10 }
 0x12c   :  { %v725_v41 = vadd.f32 %v724_v11, %v712_v37 }
 0x12d   :  { %v687_v33 = vpop.f32.mrf.mxu3  ;;  %v726_v34 = vpop.f32.mrf.mxu2 }
 0x12e   :  { %v776_v35 = vpop.f32.mrf.mxu1  ;;  %v781_v48 = vmax.f32 %v725_v41, 0.0 }
 0x130   :  { %v763_v38 = vpop.f32.mrf.mxu0  ;;  %v795_v55 = vmul.f32 %v789_v49, %v781_v48 }
 0x132   :  { %v797_v63 = vadd.f32 %v795_v55, %v794_v60 }
 0x135   :  { %v737_v42 = vpop.f32.mrf.mxu3  ;;  %v750_v43 = vpop.f32.mrf.mxu2 }
 0x136   :  { %v738_v45 = vadd.f32 %v737_v42, %v216_v40  ;;  %v778_v46 = vpop.f32.mrf.mxu1 }
 0x138   :  { %v751_v50 = vadd.f32 %v750_v43, %v738_v45  ;;  %v765_v51 = vpop.f32.mrf.mxu0 }
 0x13a   :  { %v764_v54 = vadd.f32 %v763_v38, %v751_v50 }
 0x13c   :  { %v777_v56 = vadd.f32 %v776_v35, %v764_v54 }
 0x13d   :  { %v739_v58 = vpop.f32.mrf.mxu3  ;;  %v752_v59 = vpop.f32.mrf.mxu2 }
 0x13e   :  { %v782_v61 = vmax.f32 %v777_v56, 0.0 }
 0x140   :  { %v796_v62 = vmul.f32 %v790_v57, %v782_v61 }
 0x142   :  { %v798_v0 = vadd.f32 %v797_v63, %v796_v62 }
 0x144   :  { %799 = vadd.xlane.f32.xlu1 %v798_v0 }
 0x1b7   :  { %v800_v3 = vpop.xlane.xlu1 %799 }
 0x1b8   :  { %v804_v4 = vadd.f32 %v802_v2, %v800_v3 }
 0x1ba   :  { %1200 = vtanh.f32 %v804_v4 }
 0x1c0   :  { %v1201_v5 = vpop.eup %1200 }
 0x1c1   :  { %807 = vst.msk [vmem:[%s1318_s3] sm:$0xff] %vm806_vm1, %v1201_v5 }
 0x1c2   :  { %812 = vsyncpa [#allocation3], 1 }
 0x1c3   :  { %813 = vsyncpa [#allocation5], 1 }

</bundles_post_ra>
